<compile_context>
chip_gen: v7x
topology: tpu7x:2x2x1
jax: 0.10.0
libtpu: 0.0.40
codegen_flags: <defaults>
</compile_context>

<pallas_src>
import numpy as np
import jax
import jax.numpy as jnp
from jax.experimental import pallas as pl
from jax.experimental.pallas import tpu as pltpu

_BN_EPS = 1e-5


def _fused_encoder_kernel(x_ref, w1_ref, w2_ref, aff_ref, o_ref, y_scr, mid_scr):
    """Both CNNLayers fused; all activations stay in VMEM."""
    cout = o_ref.shape[-1]

    def conv_bn_relu(x, w, gamma, beta):
        # x: (N, Lpad, Cin); w: (Cin, 2*Cout) with tap0 in cols [:Cout] and
        # tap1 in cols [Cout:].  One MXU matmul; taps combined by a shifted add.
        lout = x.shape[1] - 1
        z = jnp.einsum('nlc,cp->nlp', x, w,
                       preferred_element_type=jnp.float32)        # (N, Lpad, 2*Cout)
        y = z[:, :lout, :cout] + z[:, 1:, cout:]                   # (N, Lout, Cout)
        # Training-mode BatchNorm1d: batch stats over (N, L), biased variance,
        # one pass, folded into a single per-channel scale/shift.
        inv_nl = 1.0 / (y.shape[0] * y.shape[1])
        s = jnp.sum(y, axis=(0, 1), keepdims=True)
        q = jnp.sum(y * y, axis=(0, 1), keepdims=True)
        mean = s * inv_nl
        var = q * inv_nl - mean * mean
        scale = gamma * jax.lax.rsqrt(var + _BN_EPS)               # EUP rsqrt
        shift = beta - mean * scale
        return jnp.maximum(y * scale + shift, 0.0)                 # ReLU

    # ---------------- layer 1 ----------------
    y1 = conv_bn_relu(x_ref[...], w1_ref[...], aff_ref[0:1, :], aff_ref[1:2, :])
    lout1 = y1.shape[1]
    lpool1 = lout1 // 2

    # AvgPool1d(2): even/odd sublane-strided reads from the VMEM staging buffer
    # (VPU add, no pooling matmul).  The pooled rows land in the middle of the
    # zero-initialised scratch, which realises Conv1d's pad=1 for layer 2
    # without leaving VMEM (drops the trailing row when Lout is odd, matching
    # PyTorch's floor).
    y_scr[...] = y1
    mid_scr[...] = jnp.zeros_like(mid_scr)
    mid_scr[:, 1:1 + lpool1, :] = 0.5 * (
        y_scr[:, pl.ds(0, lpool1, stride=2), :]
        + y_scr[:, pl.ds(1, lpool1, stride=2), :])

    # ---------------- layer 2 ----------------
    y2 = conv_bn_relu(mid_scr[...], w2_ref[...], aff_ref[2:3, :], aff_ref[3:4, :])
    lout2 = y2.shape[1]
    lpool2 = lout2 // 2
    y_scr[:, :lout2, :] = y2                                        # reuse staging buf
    o_ref[...] = 0.5 * (
        y_scr[:, pl.ds(0, lpool2, stride=2), :]
        + y_scr[:, pl.ds(1, lpool2, stride=2), :])


@jax.jit
def cnn_encoder(x_ncl, params):
    """CNNEncoder forward.  x_ncl: (N, Cin, L) NCL (PyTorch layout). Returns NCL."""
    (w1, _b1, g1, be1), (w2, _b2, g2, be2) = params
    n, _cin, l = x_ncl.shape
    cout = w1.shape[0]
    lout1 = l + 1                     # L + 2*pad - k + 1
    lpool1 = lout1 // 2
    lout2 = lpool1 + 1
    lpool2 = lout2 // 2

    x = jnp.transpose(x_ncl, (0, 2, 1))               # NCL -> NLC (channels in lanes)
    x_pad = jnp.pad(x, ((0, 0), (1, 1), (0, 0)))      # Conv1d pad=1 along L

    # Conv taps packed side-by-side along the output dim: (Cin, 2*Cout).
    wcat1 = jnp.concatenate([w1[:, :, 0].T, w1[:, :, 1].T], axis=1)
    wcat2 = jnp.concatenate([w2[:, :, 0].T, w2[:, :, 1].T], axis=1)
    # Per-channel BN affine params for both layers packed into one small input.
    aff = jnp.stack([g1, be1, g2, be2], axis=0)       # (4, Cout)
    # NOTE: conv biases (_b1, _b2) are intentionally not passed — a per-channel
    # constant added before training-mode BatchNorm is cancelled by the mean
    # subtraction, so it is mathematically a no-op.

    vmem = pl.BlockSpec(memory_space=pltpu.MemorySpace.VMEM)
    out_nlc = pl.pallas_call(
        _fused_encoder_kernel,
        out_shape=jax.ShapeDtypeStruct((n, lpool2, cout), jnp.float32),
        in_specs=[vmem, vmem, vmem, vmem],
        out_specs=vmem,
        scratch_shapes=[
            pltpu.VMEM((n, lout1, cout), jnp.float32),        # ReLU staging (reused)
            pltpu.VMEM((n, lpool1 + 2, cout), jnp.float32),   # zero-padded layer-2 input
        ],
    )(x_pad, wcat1, wcat2, aff)
    return jnp.transpose(out_nlc, (0, 2, 1))           # NLC -> NCL


# ---------------- plain-JAX reference (mirrors PyTorch semantics, NCL) --------
def ref_layer(x_ncl, w, b, gamma, beta):
    n, cin, l = x_ncl.shape
    lout = l + 1
    xp = jnp.pad(x_ncl, ((0, 0), (0, 0), (1, 1)))
    y = (jnp.einsum('oc,ncl->nol', w[:, :, 0], xp[:, :, :lout])
         + jnp.einsum('oc,ncl->nol', w[:, :, 1], xp[:, :, 1:lout + 1])
         + b[None, :, None])
    mean = jnp.mean(y, axis=(0, 2), keepdims=True)
    var = jnp.mean(jnp.square(y - mean), axis=(0, 2), keepdims=True)
    y = (y - mean) / jnp.sqrt(var + _BN_EPS) * gamma[None, :, None] + beta[None, :, None]
    y = jnp.maximum(y, 0.0)
    lpool = lout // 2
    y = y[:, :, :2 * lpool].reshape(n, w.shape[0], lpool, 2).mean(-1)
    return y


def ref_encoder(x_ncl, params):
    x = x_ncl
    for (w, b, g, be) in params:
        x = ref_layer(x, w, b, g, be)
    return x


# ---------------- deterministic parameter init --------------------------------
def init_layer_params(key, cin, cout):
    k1, k2, k3, k4 = jax.random.split(key, 4)
    bound = 1.0 / np.sqrt(cin * 2)                       # fan_in = cin * kernel
    w = jax.random.uniform(k1, (cout, cin, 2), jnp.float32, -bound, bound)
    b = jax.random.uniform(k2, (cout,), jnp.float32, -bound, bound)
    # PyTorch default is gamma=1 / beta=0; use non-trivial values here so the
    # BN affine path of the kernel is actually exercised by the check.
    gamma = jax.random.uniform(k3, (cout,), jnp.float32, 0.5, 1.5)
    beta = jax.random.uniform(k4, (cout,), jnp.float32, -0.5, 0.5)
    return (w, b, gamma, beta)


if __name__ == "__main__":
    in_dim, out_dim = 4, 32
    N, L = 2, 16

    key = jax.random.PRNGKey(0)
    kx, k1, k2 = jax.random.split(key, 3)
    x = jax.random.normal(kx, (N, in_dim, L), jnp.float32)      # NCL like PyTorch

    params = [init_layer_params(k1, in_dim, out_dim),
              init_layer_params(k2, out_dim, out_dim)]

    out = jax.block_until_ready(cnn_encoder(x, params))
    ref = jax.block_until_ready(ref_encoder(x, params))

    assert out.shape == (N, out_dim, L // 4), out.shape          # (2, 32, 4)
    np.testing.assert_allclose(np.asarray(out), np.asarray(ref),
                               rtol=1e-3, atol=1e-4)
    print("KERNEL_OK")
</pallas_src>

<mosaic_0001>
module attributes {stable_mosaic.version = 11 : i64} {
  func.func @_fused_encoder_kernel(%arg0: memref<2x18x4xf32, #tpu.memory_space<vmem>>, %arg1: memref<4x64xf32, #tpu.memory_space<vmem>>, %arg2: memref<32x64xf32, #tpu.memory_space<vmem>>, %arg3: memref<4x32xf32, #tpu.memory_space<vmem>>, %arg4: memref<2x4x32xf32, #tpu.memory_space<vmem>>, %arg5: memref<2x17x32xf32, #tpu.memory_space<vmem>>, %arg6: memref<2x10x32xf32, #tpu.memory_space<vmem>>) attributes {dimension_semantics = [], scalar_prefetch = 0 : i64, scratch_operands = 2 : i64, tpu.core_type = #tpu.core_type<tc>} {
    %c0 = arith.constant 0 : index
    %c0_0 = arith.constant 0 : index
    %c0_1 = arith.constant 0 : index
    %0 = vector.load %arg0[%c0, %c0_0, %c0_1] : memref<2x18x4xf32, #tpu.memory_space<vmem>>, vector<2x18x4xf32>
    %c0_2 = arith.constant 0 : index
    %c0_3 = arith.constant 0 : index
    %1 = vector.load %arg1[%c0_2, %c0_3] : memref<4x64xf32, #tpu.memory_space<vmem>>, vector<4x64xf32>
    %c0_4 = arith.constant 0 : index
    %c0_5 = arith.constant 0 : index
    %2 = vector.load %arg3[%c0_4, %c0_5] : memref<4x32xf32, #tpu.memory_space<vmem>>, vector<1x32xf32>
    %c1 = arith.constant 1 : index
    %c0_6 = arith.constant 0 : index
    %3 = vector.load %arg3[%c1, %c0_6] : memref<4x32xf32, #tpu.memory_space<vmem>>, vector<1x32xf32>
    "tpu.trace_start"() <{level = 10 : i32, message = "nlc,cp->nlp"}> : () -> ()
    %cst = arith.constant dense<0.000000e+00> : vector<2x18x64xf32>
    %4 = tpu.matmul %0, %1, %cst {dimension_numbers = #tpu.dot_dimension_numbers<[2], [0], [0, 1], [1], [0, 0, 0, 1, 1, 1], [], []>} : vector<2x18x4xf32>, vector<4x64xf32>, vector<2x18x64xf32> -> vector<2x18x64xf32>
    "tpu.trace_stop"() : () -> ()
    %5 = vector.extract_strided_slice %4 {offsets = [0, 0, 0], sizes = [2, 17, 32], strides = [1, 1, 1]} : vector<2x18x64xf32> to vector<2x17x32xf32>
    %6 = vector.extract_strided_slice %4 {offsets = [0, 1, 32], sizes = [2, 17, 32], strides = [1, 1, 1]} : vector<2x18x64xf32> to vector<2x17x32xf32>
    %7 = arith.addf %5, %6 : vector<2x17x32xf32>
    %cst_7 = arith.constant dense<0.000000e+00> : vector<32xf32>
    %8 = vector.multi_reduction <add>, %7, %cst_7 [0, 1] : vector<2x17x32xf32> to vector<32xf32>
    %9 = vector.shape_cast %8 : vector<32xf32> to vector<1x1x32xf32>
    %10 = arith.mulf %7, %7 : vector<2x17x32xf32>
    %cst_8 = arith.constant dense<0.000000e+00> : vector<32xf32>
    %11 = vector.multi_reduction <add>, %10, %cst_8 [0, 1] : vector<2x17x32xf32> to vector<32xf32>
    %12 = vector.shape_cast %11 : vector<32xf32> to vector<1x1x32xf32>
    %cst_9 = arith.constant 0.0294117648 : f32
    %13 = vector.broadcast %cst_9 : f32 to vector<1x1x32xf32>
    %14 = arith.mulf %9, %13 : vector<1x1x32xf32>
    %cst_10 = arith.constant 0.0294117648 : f32
    %15 = vector.broadcast %cst_10 : f32 to vector<1x1x32xf32>
    %16 = arith.mulf %12, %15 : vector<1x1x32xf32>
    %17 = arith.mulf %14, %14 : vector<1x1x32xf32>
    %18 = arith.subf %16, %17 : vector<1x1x32xf32>
    %cst_11 = arith.constant 9.99999974E-6 : f32
    %19 = vector.broadcast %cst_11 : f32 to vector<1x1x32xf32>
    %20 = arith.addf %18, %19 : vector<1x1x32xf32>
    %21 = math.rsqrt %20 : vector<1x1x32xf32>
    %22 = vector.shape_cast %2 : vector<1x32xf32> to vector<1x1x32xf32>
    %23 = arith.mulf %22, %21 : vector<1x1x32xf32>
    %24 = arith.mulf %14, %23 : vector<1x1x32xf32>
    %25 = vector.shape_cast %3 : vector<1x32xf32> to vector<1x1x32xf32>
    %26 = arith.subf %25, %24 : vector<1x1x32xf32>
    %27 = vector.broadcast %23 : vector<1x1x32xf32> to vector<2x17x32xf32>
    %28 = arith.mulf %7, %27 : vector<2x17x32xf32>
    %29 = vector.broadcast %26 : vector<1x1x32xf32> to vector<2x17x32xf32>
    %30 = arith.addf %28, %29 : vector<2x17x32xf32>
    %cst_12 = arith.constant 0.000000e+00 : f32
    %31 = vector.broadcast %cst_12 : f32 to vector<2x17x32xf32>
    %32 = arith.maximumf %30, %31 : vector<2x17x32xf32>
    %c0_13 = arith.constant 0 : index
    %c0_14 = arith.constant 0 : index
    %c0_15 = arith.constant 0 : index
    %33 = vector.load %arg5[%c0_13, %c0_14, %c0_15] : memref<2x17x32xf32, #tpu.memory_space<vmem>>, vector<2x17x32xf32>
    tpu.vector_store %arg5[%c0_13, %c0_14, %c0_15], %32 {strides = array<i32>} : memref<2x17x32xf32, #tpu.memory_space<vmem>>, vector<2x17x32xf32>,
    %cst_16 = arith.constant 0.000000e+00 : f32
    %34 = vector.broadcast %cst_16 : f32 to vector<2x10x32xf32>
    %c0_17 = arith.constant 0 : index
    %c0_18 = arith.constant 0 : index
    %c0_19 = arith.constant 0 : index
    %35 = vector.load %arg6[%c0_17, %c0_18, %c0_19] : memref<2x10x32xf32, #tpu.memory_space<vmem>>, vector<2x10x32xf32>
    tpu.vector_store %arg6[%c0_17, %c0_18, %c0_19], %34 {strides = array<i32>} : memref<2x10x32xf32, #tpu.memory_space<vmem>>, vector<2x10x32xf32>,
    %c0_20 = arith.constant 0 : index
    %c0_21 = arith.constant 0 : index
    %c0_22 = arith.constant 0 : index
    %36 = tpu.strided_load %arg5[%c0_20, %c0_21, %c0_22] {strides = array<i32: 1, 2, 1>} : memref<2x17x32xf32, #tpu.memory_space<vmem>>, vector<2x8x32xf32>
    %c0_23 = arith.constant 0 : index
    %c1_24 = arith.constant 1 : index
    %c0_25 = arith.constant 0 : index
    %37 = tpu.strided_load %arg5[%c0_23, %c1_24, %c0_25] {strides = array<i32: 1, 2, 1>} : memref<2x17x32xf32, #tpu.memory_space<vmem>>, vector<2x8x32xf32>
    %38 = arith.addf %36, %37 : vector<2x8x32xf32>
    %cst_26 = arith.constant 5.000000e-01 : f32
    %39 = vector.broadcast %cst_26 : f32 to vector<2x8x32xf32>
    %40 = arith.mulf %39, %38 : vector<2x8x32xf32>
    %c0_27 = arith.constant 0 : index
    %c1_28 = arith.constant 1 : index
    %c0_29 = arith.constant 0 : index
    %41 = vector.load %arg6[%c0_27, %c1_28, %c0_29] : memref<2x10x32xf32, #tpu.memory_space<vmem>>, vector<2x8x32xf32>
    tpu.vector_store %arg6[%c0_27, %c1_28, %c0_29], %40 {strides = array<i32>} : memref<2x10x32xf32, #tpu.memory_space<vmem>>, vector<2x8x32xf32>,
    %c0_30 = arith.constant 0 : index
    %c0_31 = arith.constant 0 : index
    %c0_32 = arith.constant 0 : index
    %42 = vector.load %arg6[%c0_30, %c0_31, %c0_32] : memref<2x10x32xf32, #tpu.memory_space<vmem>>, vector<2x10x32xf32>
    %c0_33 = arith.constant 0 : index
    %c0_34 = arith.constant 0 : index
    %43 = vector.load %arg2[%c0_33, %c0_34] : memref<32x64xf32, #tpu.memory_space<vmem>>, vector<32x64xf32>
    %c2 = arith.constant 2 : index
    %c0_35 = arith.constant 0 : index
    %44 = vector.load %arg3[%c2, %c0_35] : memref<4x32xf32, #tpu.memory_space<vmem>>, vector<1x32xf32>
    %c3 = arith.constant 3 : index
    %c0_36 = arith.constant 0 : index
    %45 = vector.load %arg3[%c3, %c0_36] : memref<4x32xf32, #tpu.memory_space<vmem>>, vector<1x32xf32>
    "tpu.trace_start"() <{level = 10 : i32, message = "nlc,cp->nlp"}> : () -> ()
    %cst_37 = arith.constant dense<0.000000e+00> : vector<2x10x64xf32>
    %46 = tpu.matmul %42, %43, %cst_37 {dimension_numbers = #tpu.dot_dimension_numbers<[2], [0], [0, 1], [1], [0, 0, 0, 1, 1, 1], [], []>} : vector<2x10x32xf32>, vector<32x64xf32>, vector<2x10x64xf32> -> vector<2x10x64xf32>
    "tpu.trace_stop"() : () -> ()
    %47 = vector.extract_strided_slice %46 {offsets = [0, 0, 0], sizes = [2, 9, 32], strides = [1, 1, 1]} : vector<2x10x64xf32> to vector<2x9x32xf32>
    %48 = vector.extract_strided_slice %46 {offsets = [0, 1, 32], sizes = [2, 9, 32], strides = [1, 1, 1]} : vector<2x10x64xf32> to vector<2x9x32xf32>
    %49 = arith.addf %47, %48 : vector<2x9x32xf32>
    %cst_38 = arith.constant dense<0.000000e+00> : vector<32xf32>
    %50 = vector.multi_reduction <add>, %49, %cst_38 [0, 1] : vector<2x9x32xf32> to vector<32xf32>
    %51 = vector.shape_cast %50 : vector<32xf32> to vector<1x1x32xf32>
    %52 = arith.mulf %49, %49 : vector<2x9x32xf32>
    %cst_39 = arith.constant dense<0.000000e+00> : vector<32xf32>
    %53 = vector.multi_reduction <add>, %52, %cst_39 [0, 1] : vector<2x9x32xf32> to vector<32xf32>
    %54 = vector.shape_cast %53 : vector<32xf32> to vector<1x1x32xf32>
    %cst_40 = arith.constant 0.055555556 : f32
    %55 = vector.broadcast %cst_40 : f32 to vector<1x1x32xf32>
    %56 = arith.mulf %51, %55 : vector<1x1x32xf32>
    %cst_41 = arith.constant 0.055555556 : f32
    %57 = vector.broadcast %cst_41 : f32 to vector<1x1x32xf32>
    %58 = arith.mulf %54, %57 : vector<1x1x32xf32>
    %59 = arith.mulf %56, %56 : vector<1x1x32xf32>
    %60 = arith.subf %58, %59 : vector<1x1x32xf32>
    %cst_42 = arith.constant 9.99999974E-6 : f32
    %61 = vector.broadcast %cst_42 : f32 to vector<1x1x32xf32>
    %62 = arith.addf %60, %61 : vector<1x1x32xf32>
    %63 = math.rsqrt %62 : vector<1x1x32xf32>
    %64 = vector.shape_cast %44 : vector<1x32xf32> to vector<1x1x32xf32>
    %65 = arith.mulf %64, %63 : vector<1x1x32xf32>
    %66 = arith.mulf %56, %65 : vector<1x1x32xf32>
    %67 = vector.shape_cast %45 : vector<1x32xf32> to vector<1x1x32xf32>
    %68 = arith.subf %67, %66 : vector<1x1x32xf32>
    %69 = vector.broadcast %65 : vector<1x1x32xf32> to vector<2x9x32xf32>
    %70 = arith.mulf %49, %69 : vector<2x9x32xf32>
    %71 = vector.broadcast %68 : vector<1x1x32xf32> to vector<2x9x32xf32>
    %72 = arith.addf %70, %71 : vector<2x9x32xf32>
    %cst_43 = arith.constant 0.000000e+00 : f32
    %73 = vector.broadcast %cst_43 : f32 to vector<2x9x32xf32>
    %74 = arith.maximumf %72, %73 : vector<2x9x32xf32>
    %c0_44 = arith.constant 0 : index
    %c0_45 = arith.constant 0 : index
    %c0_46 = arith.constant 0 : index
    %75 = vector.load %arg5[%c0_44, %c0_45, %c0_46] : memref<2x17x32xf32, #tpu.memory_space<vmem>>, vector<2x9x32xf32>
    tpu.vector_store %arg5[%c0_44, %c0_45, %c0_46], %74 {strides = array<i32>} : memref<2x17x32xf32, #tpu.memory_space<vmem>>, vector<2x9x32xf32>,
    %c0_47 = arith.constant 0 : index
    %c0_48 = arith.constant 0 : index
    %c0_49 = arith.constant 0 : index
    %76 = tpu.strided_load %arg5[%c0_47, %c0_48, %c0_49] {strides = array<i32: 1, 2, 1>} : memref<2x17x32xf32, #tpu.memory_space<vmem>>, vector<2x4x32xf32>
    %c0_50 = arith.constant 0 : index
    %c1_51 = arith.constant 1 : index
    %c0_52 = arith.constant 0 : index
    %77 = tpu.strided_load %arg5[%c0_50, %c1_51, %c0_52] {strides = array<i32: 1, 2, 1>} : memref<2x17x32xf32, #tpu.memory_space<vmem>>, vector<2x4x32xf32>
    %78 = arith.addf %76, %77 : vector<2x4x32xf32>
    %cst_53 = arith.constant 5.000000e-01 : f32
    %79 = vector.broadcast %cst_53 : f32 to vector<2x4x32xf32>
    %80 = arith.mulf %79, %78 : vector<2x4x32xf32>
    %c0_54 = arith.constant 0 : index
    %c0_55 = arith.constant 0 : index
    %c0_56 = arith.constant 0 : index
    %81 = vector.load %arg4[%c0_54, %c0_55, %c0_56] : memref<2x4x32xf32, #tpu.memory_space<vmem>>, vector<2x4x32xf32>
    tpu.vector_store %arg4[%c0_54, %c0_55, %c0_56], %80 {strides = array<i32>} : memref<2x4x32xf32, #tpu.memory_space<vmem>>, vector<2x4x32xf32>,
    return
  }
}

</mosaic_0001>

<bundles_post_ra>
// kernel: cnn_encoder.1
= control target key start
LH: loop header
LB: loop body
LE: loop exit
PB: predicated region body
PF: predicated region fallthrough
CT: control target
= control target key end

     0   :  { %vm202_vm0 = vcmask 1043456   ;;  %v37_v1 = vlaneseq  ;;  %v1806_v2 = vmov 0.0   ;;  %vm1807_vm1 = vmmov 0   ;;  %s2389_s0 = inlined_call_operand.vmem [shape: f32[2,18,4], index: 0, kind: input, shape index: {}]   ;;  %s2390_s1 = inlined_call_operand.vmem [shape: f32[4,64], index: 1, kind: input, shape index: {}]   ;;  %s2391_s2 = inlined_call_operand.vmem [shape: f32[32,64], index: 2, kind: input, shape index: {}]   ;;  %s2392_s3 = inlined_call_operand.vmem [shape: f32[4,32], index: 3, kind: input, shape index: {}]   ;;  %s2393_s4 = inlined_call_operand.hbm [shape: f32[2,4,32], index: 4, kind: output, shape index: {}]  }
   0x1   :  { %v24_v0 = vld [vmem:[%s2390_s1] sm:$0xf]  ;;  %1724 = vmatprep.subr.mxu0 %v1806_v2  ;;  %1726 = vmatprep.mubr.msk.f32.mxu0 %vm1807_vm1, %v1806_v2  ;;  %v19_v4 = vld [vmem:[%s2389_s0 + $0x8] sm:$0xff]  ;;  %v1808_v5 = vmov 1983009808   ;;  %v21_v8 = vld [vmem:[%s2389_s0 + $0x18] sm:$0xff] }
   0x2   :  { %v18_v3 = vld [vmem:[%s2389_s0] sm:$0xff]  ;;  %1725 = vmatpush3.msk.msra.mxu0 %vm202_vm0, %v24_v0  ;;  %v35_v6 = vunpack.c.l.s4 %v1808_v5  ;;  %v1851_v7 = vshrl.u32 %v37_v1, 7  ;;  %1749 = vmatprep.mubr.msk.f32.mxu1 %vm1807_vm1, %v1806_v2 }
   0x3   :  { %9 = vsyncpa [#allocation5], 0  ;;  %v33_v9 = vcombine.high %v18_v3, %v18_v3  ;;  %v50_v11 = vcombine.high %v19_v4, %v19_v4  ;;  %v22_v12 = vld [vmem:[%s2389_s0 + $0x20] sm:$0xff]  ;;  %v74_v13 = vcombine.high %v21_v8, %v21_v8  ;;  %vm191_vm2 = vcmask 31744  }
   0x4   :  { %v36_v10 = vunpack.c.0.s8 %v35_v6  ;;  %v91_v15 = vcombine.high %v22_v12, %v22_v12  ;;  %v1694_v27 = vld.sshfl [vmem:[%s2389_s0 + $0x10] sm:$0x3 pattern:$0x76325410]  ;;  %vm395_vm3 = vcmask 1040384   ;;  %vm396_vm4 = vcmask 1042434  }
   0x5   :  { %v1695_v52 = vld.sshfl [vmem:[%s2389_s0 + $0x28] sm:$0x3 pattern:$0x76325410]  ;;  %vm397_vm5 = vmor %vm395_vm3, %vm396_vm4  ;;  %vm398_vm6 = vcmask 1044484   ;;  %vm400_vm8 = vcmask 1046534  }
   0x6   :  { %v1862_v14 = vsub.s32 %v36_v10, %v1851_v7  ;;  %vm399_vm7 = vmor %vm397_vm5, %vm398_vm6  ;;  %s1809_s0 = smov 96   ;;  %vm632_vm10 = vcmask 261120   ;;  %vm1020_vm11 = vcmask 254976   ;;  %vm636_vm12 = vcmask 253952  }
   0x7   :  { %vm1910_vm9 = vmor %vm399_vm7, %vm400_vm8  ;;  %1019 = vst.msk [vmem:[#allocation3] sm:$0xff] %vm632_vm10, %v1806_v2  ;;  %vm1675_vm13 = vcmask 257024  }
   0x8   :  { %v40_v16 = vrot.slane %v18_v3, %v1862_v14  ;;  %v47_v17 = vrot.slane %v33_v9, %v1862_v14  ;;  %v57_v18 = vrot.slane %v19_v4, %v1862_v14  ;;  %v64_v19 = vrot.slane %v50_v11, %v1862_v14  ;;  %1022 = vst.msk [vmem:[#allocation3 + $0x10] sm:$0xff] %vm632_vm10, %v1806_v2 }
   0x9   :  { %v81_v20 = vrot.slane %v21_v8, %v1862_v14  ;;  %v88_v21 = vrot.slane %v74_v13, %v1862_v14  ;;  %v98_v22 = vrot.slane %v22_v12, %v1862_v14  ;;  %v105_v29 = vrot.slane %v91_v15, %v1862_v14  ;;  %1021 = vst.msk [vmem:[#allocation3 + $0x8] sm:$0x3] %vm1020_vm11, %v1806_v2 }
   0xa   :  { %v48_v23 = vcombine.high %v40_v16, %v40_v16  ;;  %v49_v24 = vcombine.high %v47_v17, %v47_v17  ;;  %v65_v25 = vcombine.high %v57_v18, %v57_v18  ;;  %v66_v26 = vcombine.high %v64_v19, %v64_v19  ;;  %1023 = vst.msk [vmem:[#allocation3 + $0x18] sm:$0x3] %vm1020_vm11, %v1806_v2 }
   0xb   :  { %v89_v28 = vcombine.high %v81_v20, %v81_v20  ;;  %v149_v34 = vcombine.low %v1694_v27, %v81_v20  ;;  %v90_v36 = vcombine.high %v88_v21, %v88_v21  ;;  %v106_v37 = vcombine.high %v98_v22, %v98_v22 }
   0xc   :  { %v115_v30 = vcombine.low %v40_v16, %v48_v23  ;;  %v116_v31 = vcombine.low %v47_v17, %v49_v24  ;;  %v132_v32 = vcombine.low %v57_v18, %v65_v25  ;;  %v133_v33 = vcombine.low %v64_v19, %v66_v26 }
   0xd   :  { %v150_v35 = vcombine.low %v89_v28, %v88_v21  ;;  %v157_v43 = vrot.slane %v149_v34, %v1862_v14  ;;  %v166_v46 = vcombine.low %v90_v36, %v98_v22  ;;  %v167_v47 = vcombine.low %v106_v37, %v105_v29 }
   0xe   :  { %v123_v38 = vrot.slane %v115_v30, %v1862_v14  ;;  %v130_v39 = vrot.slane %v116_v31, %v1862_v14  ;;  %v140_v40 = vrot.slane %v132_v32, %v1862_v14  ;;  %v147_v41 = vrot.slane %v133_v33, %v1862_v14 }
   0xf   :  { %v164_v45 = vrot.slane %v150_v35, %v1862_v14  ;;  %v174_v49 = vrot.slane %v166_v46, %v1862_v14  ;;  %v181_v50 = vrot.slane %v167_v47, %v1862_v14  ;;  %v107_v51 = vcombine.high %v105_v29, %v105_v29 }
  0x10   :  { %v131_v42 = vcombine.low %v123_v38, %v130_v39  ;;  %v148_v44 = vcombine.low %v140_v40, %v147_v41 }
  0x11   :  { %v165_v48 = vcombine.low %v157_v43, %v164_v45  ;;  %v182_v53 = vcombine.low %v174_v49, %v181_v50  ;;  %v183_v54 = vcombine.low %v107_v51, %v1695_v52 }
  0x12   :  { %1727 = vmatmul.mubr.msk.f32.vlgmr.msra.gmra.mrb[0].mxu0 %vm191_vm2, %v131_v42 }
  0x13   :  { %1729 = vmatprep.mubr.msk.f32.mxu0 %vm1807_vm1, %v1806_v2  ;;  %v190_v55 = vrot.slane %v183_v54, %v1862_v14 }
  0x16   :  { %1730 = vmatmul.mubr.msk.f32.gmra.mrb[2].mxu0 %vm191_vm2, %v148_v44 }
  0x17   :  { %1732 = vmatprep.mubr.msk.f32.mxu0 %vm1807_vm1, %v1806_v2 }
  0x1a   :  { %1733 = vmatmul.mubr.msk.f32.gmra.mrb[4].mxu0 %vm191_vm2, %v165_v48 }
  0x1b   :  { %1735 = vmatprep.mubr.msk.f32.mxu0 %vm1807_vm1, %v1806_v2 }
  0x1e   :  { %1736 = vmatmul.mubr.msk.f32.gmra.mrb[6].mxu0 %vm191_vm2, %v182_v53 }
  0x1f   :  { %1738 = vmatprep.mubr.msk.f32.mxu0 %vm1807_vm1, %v1806_v2 }
  0x22   :  { %1739 = vmatmul.mubr.msk.f32.gmra.mrb[8].mxu0 %vm191_vm2, %v190_v55 }
  0xe5   :  { %v272_v56 = vpop.f32.mrb[0].mxu0 }
  0xe6   :  { %v301_v57 = vcombine.high %v272_v56, %v272_v56  ;;  %v1901_v58 = vrot.slane %v272_v56, %v1862_v14  ;;  %v1728_v59 = vpop.f32.mrb[1].mxu0 }
  0xe8   :  { %v1904_v60 = vrot.slane %v301_v57, %v1862_v14  ;;  %v1908_v61 = vcombine.high %v1901_v58, %v1901_v58  ;;  %v1702_v0 = vrot.slane %v1901_v58, 9 }
  0xe9   :  { %v277_v62 = vpop.f32.mrb[2].mxu0 }
  0xea   :  { %v318_v1 = vcombine.high %v277_v62, %v277_v62  ;;  %v1916_v3 = vrot.slane %v277_v62, %v1862_v14  ;;  %v404_v4 = vrot.slane %v1908_v61, 7  ;;  %v1731_v5 = vpop.f32.mrb[3].mxu0  ;;  %v1921_v6 = vcombine.high %v1904_v60, %v1904_v60 }
  0xeb   :  { %v407_v8 = vrot.slane %v1904_v60, 7 }
  0xec   :  { %v1925_v9 = vrot.slane %v318_v1, %v1862_v14  ;;  %v1929_v10 = vcombine.high %v1916_v3, %v1916_v3  ;;  %v405_v11 = vsel %vm1910_vm9, %v1702_v0, %v404_v4  ;;  %v410_v12 = vrot.slane %v1921_v6, 7 }
  0xed   :  { %454 = vrot.lane.b32.xlu0 %v405_v11, %s1809_s0  ;;  %v409_v13 = vrot.slane %v407_v8, 2  ;;  %v406_v15 = vrot.slane %v404_v4, 2  ;;  %v413_v16 = vrot.slane %v1916_v3, 7  ;;  %v282_v17 = vpop.f32.mrb[4].mxu0 }
  0xee   :  { %v335_v18 = vcombine.high %v282_v17, %v282_v17  ;;  %v1734_v19 = vpop.f32.mrb[5].mxu0  ;;  %v412_v21 = vrot.slane %v410_v12, 2  ;;  %v416_v23 = vrot.slane %v1929_v10, 7  ;;  %v419_v25 = vrot.slane %v1925_v9, 7 }
  0xef   :  { %v411_v20 = vsel %vm1910_vm9, %v409_v13, %v410_v12  ;;  %v415_v22 = vrot.slane %v413_v16, 2  ;;  %v408_v24 = vsel %vm1910_vm9, %v406_v15, %v407_v8  ;;  %v1949_v27 = vcombine.high %v1925_v9, %v1925_v9 }
  0xf0   :  { %458 = vrot.lane.b32.xlu1 %v411_v20, %s1809_s0  ;;  %v1945_v26 = vrot.slane %v335_v18, %v1862_v14  ;;  %v1952_v29 = vrot.slane %v282_v17, %v1862_v14  ;;  %v414_v32 = vsel %vm1910_vm9, %v412_v21, %v413_v16  ;;  %v418_v33 = vrot.slane %v416_v23, 2 }
  0xf1   :  { %456 = vrot.lane.b32.xlu0 %v408_v24, %s1809_s0  ;;  %v287_v28 = vpop.f32.mrb[6].mxu0  ;;  %v417_v30 = vsel %vm1910_vm9, %v415_v22, %v416_v23  ;;  %v422_v34 = vrot.slane %v1949_v27, 7  ;;  %v421_v35 = vrot.slane %v419_v25, 2 }
  0xf2   :  { %v1737_v31 = vpop.f32.mrb[7].mxu0  ;;  %v1961_v36 = vrot.slane %v287_v28, %v1862_v14  ;;  %v1966_v37 = vcombine.high %v1945_v26, %v1945_v26  ;;  %v430_v38 = vrot.slane %v1945_v26, 7  ;;  %v425_v40 = vrot.slane %v1952_v29, 7 }
  0xf3   :  { %v420_v42 = vsel %vm1910_vm9, %v418_v33, %v419_v25  ;;  %v424_v43 = vrot.slane %v422_v34, 2  ;;  %v352_v44 = vcombine.high %v287_v28, %v287_v28  ;;  %v1974_v45 = vcombine.high %v1952_v29, %v1952_v29  ;;  %v1041_v25 = vld [vmem:[%s2391_s2] sm:$0xff]  ;;  %v1042_v28 = vld [vmem:[%s2391_s2 + $0x8] sm:$0xff]  ;;  %v1044_v33 = vld [vmem:[%s2391_s2 + $0x18] sm:$0xff] }
  0xf4   :  { %460 = vrot.lane.b32.xlu1 %v414_v32, %s1809_s0  ;;  %v423_v46 = vsel %vm1910_vm9, %v421_v35, %v422_v34  ;;  %v1981_v47 = vcombine.high %v1961_v36, %v1961_v36  ;;  %v427_v48 = vrot.slane %v425_v40, 2  ;;  %v436_v49 = vrot.slane %v1961_v36, 7 }
  0xf5   :  { %462 = vrot.lane.b32.xlu0 %v417_v30, %s1809_s0  ;;  %v292_v39 = vpop.f32.mrb[8].mxu0  ;;  %v432_v50 = vrot.slane %v430_v38, 2  ;;  %v433_v51 = vrot.slane %v1966_v37, 7  ;;  %v426_v52 = vsel %vm1910_vm9, %v424_v43, %v425_v40  ;;  %v1993_v53 = vrot.slane %v352_v44, %v1862_v14  ;;  %v1043_v30 = vld [vmem:[%s2391_s2 + $0x10] sm:$0xff] }
  0xf6   :  { %v1740_v41 = vpop.f32.mrb[9].mxu0  ;;  %v1703_v54 = vrot.slane %v1974_v45, 9  ;;  %v438_v56 = vrot.slane %v436_v49, 2  ;;  %v439_v57 = vrot.slane %v1981_v47, 7  ;;  %v2009_v0 = vrot.slane %v292_v39, %v1862_v14 }
  0xf7   :  { %v434_v55 = vsel %vm1910_vm9, %v432_v50, %v433_v51  ;;  %v2003_v59 = vcombine.high %v1993_v53, %v1993_v53  ;;  %v435_v1 = vrot.slane %v433_v51, 2  ;;  %v442_v4 = vrot.slane %v1993_v53, 7 }
  0xf8   :  { %464 = vrot.lane.b32.xlu1 %v420_v42, %s1809_s0  ;;  %v431_v62 = vsel %vm1910_vm9, %v1703_v54, %v430_v38  ;;  %v440_v5 = vsel %vm1910_vm9, %v438_v56, %v439_v57  ;;  %v2017_v8 = vcombine.high %v2009_v0, %v2009_v0  ;;  %v441_v11 = vrot.slane %v439_v57, 2 }
  0xf9   :  { %466 = vrot.lane.b32.xlu0 %v423_v46, %s1809_s0  ;;  %v445_v12 = vrot.slane %v2003_v59, 7  ;;  %v448_v13 = vrot.slane %v2009_v0, 7  ;;  %v437_v15 = vsel %vm1910_vm9, %v435_v1, %v436_v49  ;;  %v444_v16 = vrot.slane %v442_v4, 2 }
  0xfa   :  { %v451_v18 = vrot.slane %v2017_v8, 7  ;;  %v443_v19 = vsel %vm1910_vm9, %v441_v11, %v442_v4  ;;  %v1810_v31 = vmov 0.0|0.0   ;;  %v1759_v32 = vpack.c.bf16 %v1042_v28, %v1041_v25 }
  0xfb   :  { %v450_v17 = vrot.slane %v448_v13, 2  ;;  %v447_v20 = vrot.slane %v445_v12, 2  ;;  %v446_v21 = vsel %vm1910_vm9, %v444_v16, %v445_v12  ;;  %1758 = vmatprep.subr.bf16.mxu1 %v1810_v31  ;;  %v1762_v34 = vpack.c.bf16 %v1044_v33, %v1043_v30 }
  0xfc   :  { %468 = vrot.lane.b32.xlu1 %v426_v52, %s1809_s0  ;;  %v453_v24 = vrot.slane %v451_v18, 2  ;;  %1760 = vmatpush3.bf16.msra.mxu1 %v1759_v32 }
  0xfd   :  { %470 = vrot.lane.b32.xlu0 %v427_v48, %s1809_s0  ;;  %v452_v22 = vsel %vm1910_vm9, %v450_v17, %v451_v18  ;;  %v449_v23 = vsel %vm1910_vm9, %v447_v20, %v448_v13  ;;  %1761 = vmatprep.subr.bf16.mxu1 %v1810_v31 }
 0x100   :  { %474 = vrot.lane.b32.xlu1 %v434_v55, %s1809_s0  ;;  %1763 = vmatpush3.bf16.msra.mxu1 %v1762_v34 }
 0x101   :  { %472 = vrot.lane.b32.xlu0 %v431_v62, %s1809_s0 }
 0x104   :  { %478 = vrot.lane.b32.xlu1 %v440_v5, %s1809_s0 }
 0x105   :  { %476 = vrot.lane.b32.xlu0 %v437_v15, %s1809_s0 }
 0x108   :  { %480 = vrot.lane.b32.xlu1 %v443_v19, %s1809_s0 }
 0x109   :  { %482 = vrot.lane.b32.xlu0 %v446_v21, %s1809_s0 }
 0x10c   :  { %484 = vrot.lane.b32.xlu1 %v449_v23, %s1809_s0 }
 0x10d   :  { %486 = vrot.lane.b32.xlu0 %v452_v22, %s1809_s0 }
 0x110   :  { %488 = vrot.lane.b32.xlu1 %v453_v24, %s1809_s0 }
 0x15f   :  { %v455_v35 = vpop.permute.xlu0 %454 }
 0x160   :  { %v2066_v50 = vadd.f32 %v455_v35, %v1901_v58 }
 0x162   :  { %v459_v38 = vpop.permute.xlu1 %458  ;;  %v651_v55 = vmul.f32 %v2066_v50, %v2066_v50 }
 0x163   :  { %v457_v39 = vpop.permute.xlu0 %456  ;;  %v2069_v51 = vadd.f32 %v459_v38, %v1904_v60 }
 0x164   :  { %v2054_v44 = vadd.f32 %v457_v39, %v1908_v61 }
 0x165   :  { %v653_v62 = vmul.f32 %v2069_v51, %v2069_v51 }
 0x166   :  { %v461_v40 = vpop.permute.xlu1 %460  ;;  %v544_v1 = vcombine.low %v2066_v50, %v2054_v44 }
 0x167   :  { %v463_v41 = vpop.permute.xlu0 %462  ;;  %v2057_v46 = vadd.f32 %v461_v40, %v1921_v6 }
 0x168   :  { %v2072_v54 = vadd.f32 %v463_v41, %v1916_v3  ;;  %v552_v22 = vrot.slane %v544_v1, %v1862_v14 }
 0x169   :  { %v654_v58 = vmul.f32 %v2057_v46, %v2057_v46 }
 0x16a   :  { %v465_v42 = vpop.permute.xlu1 %464  ;;  %v655_v4 = vmul.f32 %v2072_v54, %v2072_v54 }
 0x16b   :  { %v467_v43 = vpop.permute.xlu0 %466  ;;  %v2060_v48 = vadd.f32 %v465_v42, %v1929_v10  ;;  %v652_v10 = vmul.f32 %v2054_v44, %v2054_v44  ;;  %v688_v17 = vcombine.low %v653_v62, %v654_v58 }
 0x16c   :  { %v2063_v49 = vadd.f32 %v467_v43, %v1925_v9  ;;  %v545_v9 = vcombine.low %v2069_v51, %v2057_v46 }
 0x16d   :  { %v656_v60 = vmul.f32 %v2060_v48, %v2060_v48  ;;  %v687_v12 = vcombine.low %v651_v55, %v652_v10  ;;  %v561_v13 = vcombine.low %v2072_v54, %v2060_v48  ;;  %v702_v32 = vrot.slane %v688_v17, %v1862_v14 }
 0x16e   :  { %v469_v52 = vpop.permute.xlu1 %468  ;;  %v657_v3 = vmul.f32 %v2063_v49, %v2063_v49  ;;  %v559_v16 = vrot.slane %v545_v9, %v1862_v14 }
 0x16f   :  { %v2075_v61 = vadd.f32 %v469_v52, %v1949_v27  ;;  %v471_v6 = vpop.permute.xlu0 %470  ;;  %v704_v18 = vcombine.low %v655_v4, %v656_v60  ;;  %v569_v28 = vrot.slane %v561_v13, %v1862_v14 }
 0x170   :  { %v516_v34 = vadd.f32 %v471_v6, %v1952_v29 }
 0x171   :  { %v658_v27 = vmul.f32 %v2075_v61, %v2075_v61  ;;  %v562_v56 = vcombine.low %v2063_v49, %v2075_v61  ;;  %v712_v33 = vrot.slane %v704_v18, %v1862_v14 }
 0x172   :  { %v475_v57 = vpop.permute.xlu1 %474  ;;  %v659_v60 = vmul.f32 %v516_v34, %v516_v34 }
 0x173   :  { %v705_v5 = vcombine.low %v657_v3, %v658_v27  ;;  %v473_v11 = vpop.permute.xlu0 %472  ;;  %v576_v19 = vrot.slane %v562_v56, %v1862_v14  ;;  %v2107_v20 = vadd.f32 %v475_v57, %v1945_v26  ;;  %v560_v26 = vcombine.low %v552_v22, %v559_v16 }
 0x174   :  { %v2102_v15 = vadd.f32 %v473_v11, %v1974_v45  ;;  %v695_v45 = vrot.slane %v687_v12, %v1862_v14  ;;  %v584_v27 = vrot.slane %v516_v34, %v1862_v14 }
 0x175   :  { %v719_v23 = vrot.slane %v705_v5, %v1862_v14  ;;  %v661_v35 = vmul.f32 %v2107_v20, %v2107_v20  ;;  %v633_v58 = vsel %vm632_vm10, %v560_v26, 0.0 }
 0x176   :  { %v479_v21 = vpop.permute.xlu1 %478  ;;  %v660_v30 = vmul.f32 %v2102_v15, %v2102_v15  ;;  %v585_v38 = vcombine.low %v2102_v15, %v2107_v20  ;;  %v703_v9 = vcombine.low %v695_v45, %v702_v32 }
 0x177   :  { %v2112_v24 = vadd.f32 %v479_v21, %v1961_v36  ;;  %v477_v25 = vpop.permute.xlu0 %476  ;;  %v577_v36 = vcombine.low %v569_v28, %v576_v19  ;;  %v727_v19 = vrot.slane %v659_v60, %v1862_v14 }
 0x178   :  { %v2119_v31 = vadd.f32 %v477_v25, %v1966_v37  ;;  %v720_v37 = vcombine.low %v712_v33, %v719_v23  ;;  %v728_v52 = vcombine.low %v660_v30, %v661_v35  ;;  %v775_v17 = vsel %vm632_vm10, %v703_v9, 0.0 }
 0x179   :  { %v663_v41 = vmul.f32 %v2112_v24, %v2112_v24  ;;  %v634_v55 = vsel %vm632_vm10, %v577_v36, 0.0  ;;  %v778_v35 = vsel %vm636_vm12, %v727_v19, 0.0 }
 0x17a   :  { %v586_v39 = vcombine.low %v2119_v31, %v2112_v24  ;;  %v481_v40 = vpop.permute.xlu1 %480  ;;  %v662_v42 = vmul.f32 %v2119_v31, %v2119_v31  ;;  %v776_v62 = vsel %vm632_vm10, %v720_v37, 0.0  ;;  %v736_v11 = vrot.slane %v728_v52, %v1862_v14 }
 0x17b   :  { %v2135_v29 = vadd.f32 %v481_v40, %v1981_v47  ;;  %v483_v43 = vpop.permute.xlu0 %482  ;;  %v593_v47 = vrot.slane %v585_v38, %v1862_v14  ;;  %v635_v18 = vadd.f32 %v634_v55, %v633_v58  ;;  %v777_v28 = vadd.f32 %v776_v62, %v775_v17 }
 0x17c   :  { %v600_v6 = vrot.slane %v586_v39, %v1862_v14  ;;  %v2139_v10 = vadd.f32 %v483_v43, %v1993_v53  ;;  %v729_v3 = vcombine.low %v662_v42, %v663_v41 }
 0x17d   :  { %v664_v1 = vmul.f32 %v2135_v29, %v2135_v29  ;;  %v779_v42 = vadd.f32 %v778_v35, %v777_v28  ;;  %v25_v28 = vld [vmem:[%s2392_s3] sm:$0x1] }
 0x17e   :  { %v665_v56 = vmul.f32 %v2139_v10, %v2139_v10  ;;  %v485_v57 = vpop.permute.xlu1 %484  ;;  %v743_v53 = vrot.slane %v729_v3, %v1862_v14  ;;  %v601_v12 = vcombine.low %v593_v47, %v600_v6  ;;  %v602_v13 = vcombine.low %v2135_v29, %v2139_v10 }
 0x17f   :  { %v2152_v4 = vadd.f32 %v485_v57, %v2003_v59  ;;  %v487_v5 = vpop.permute.xlu0 %486 }
 0x180   :  { %v2158_v16 = vadd.f32 %v487_v5, %v2009_v0  ;;  %v745_v21 = vcombine.low %v664_v1, %v665_v56  ;;  %v744_v22 = vcombine.low %v736_v11, %v743_v53  ;;  %v637_v0 = vsel %vm636_vm12, %v584_v27, 0.0 }
 0x181   :  { %v666_v59 = vmul.f32 %v2152_v4, %v2152_v4  ;;  %v639_v26 = vsel %vm632_vm10, %v601_v12, 0.0  ;;  %v610_v32 = vrot.slane %v602_v13, %v1862_v14  ;;  %v638_v36 = vadd.f32 %v637_v0, %v635_v18 }
 0x182   :  { %v603_v23 = vcombine.low %v2152_v4, %v2158_v16  ;;  %v667_v25 = vmul.f32 %v2158_v16, %v2158_v16  ;;  %v489_v45 = vpop.permute.xlu1 %488  ;;  %v753_v38 = vrot.slane %v745_v21, %v1862_v14  ;;  %v780_v40 = vsel %vm632_vm10, %v744_v22, 0.0 }
 0x183   :  { %v525_v30 = vadd.f32 %v489_v45, %v2017_v8  ;;  %v640_v43 = vadd.f32 %v639_v26, %v638_v36  ;;  %v781_v58 = vadd.f32 %v780_v40, %v779_v42  ;;  %v26_v36 = vld [vmem:[%s2392_s3 + $0x1] sm:$0x1] }
 0x184   :  { %v617_v33 = vrot.slane %v603_v23, %v1862_v14  ;;  %v746_v34 = vcombine.low %v666_v59, %v667_v25 }
 0x185   :  { %v668_v39 = vmul.f32 %v525_v30, %v525_v30  ;;  %v625_v8 = vrot.slane %v525_v30, %v1862_v14  ;;  %v2187_v30 = vsub.s32 0, %v1851_v7 }
 0x186   :  { %v618_v37 = vcombine.low %v610_v32, %v617_v33  ;;  %v760_v41 = vrot.slane %v746_v34, %v1862_v14 }
 0x187   :  { %v768_v9 = vrot.slane %v668_v39, %v1862_v14  ;;  %v643_v3 = vsel %vm636_vm12, %v625_v8, 0.0 }
 0x188   :  { %v761_v52 = vcombine.low %v753_v38, %v760_v41  ;;  %v641_v6 = vsel %vm632_vm10, %v618_v37, 0.0 }
 0x189   :  { %v642_v60 = vadd.f32 %v641_v6, %v640_v43  ;;  %v784_v56 = vsel %vm636_vm12, %v768_v9, 0.0 }
 0x18a   :  { %v782_v27 = vsel %vm632_vm10, %v761_v52, 0.0 }
 0x18b   :  { %v644_v55 = vadd.f32 %v643_v3, %v642_v60  ;;  %v783_v47 = vadd.f32 %v782_v27, %v781_v58 }
 0x18d   :  { %v645_v57 = vrot.slane %v644_v55, 4  ;;  %v785_v62 = vadd.f32 %v784_v56, %v783_v47 }
 0x18f   :  { %v646_v53 = vadd.f32 %v645_v57, %v644_v55  ;;  %v786_v1 = vrot.slane %v785_v62, 4 }
 0x191   :  { %v647_v5 = vrot.slane %v646_v53, 2  ;;  %v787_v11 = vadd.f32 %v786_v1, %v785_v62 }
 0x193   :  { %v648_v12 = vadd.f32 %v647_v5, %v646_v53  ;;  %v788_v13 = vrot.slane %v787_v11, 2 }
 0x195   :  { %v649_v17 = vrot.slane %v648_v12, 1  ;;  %v789_v18 = vadd.f32 %v788_v13, %v787_v11 }
 0x197   :  { %v650_v19 = vadd.f32 %v649_v17, %v648_v12  ;;  %v790_v21 = vrot.slane %v789_v18, 1 }
 0x199   :  { %v791_v22 = vadd.f32 %v790_v21, %v789_v18  ;;  %v792_v59 = vmul.f32 0.029411765, %v650_v19 }
 0x19b   :  { %v793_v23 = vmul.f32 0.029411765, %v791_v22  ;;  %v794_v25 = vmul.f32 %v792_v59, %v792_v59 }
 0x19d   :  { %v795_v45 = vsub.f32 %v793_v23, %v794_v25 }
 0x19f   :  { %v796_v0 = vadd.f32 1e-05, %v795_v45 }
 0x1a1   :  { %1778 = vrsqrt.f32 %v796_v0 }
 0x1ab   :  { %v1779_v26 = vpop.eup %1778 }
 0x1ac   :  { %v798_v32 = vmul.f32 %v1779_v26, %v25_v28 }
 0x1ae   :  { %v804_v33 = vrot.slane %v798_v32, %v2187_v30  ;;  %v799_v34 = vmul.f32 %v798_v32, %v792_v59 }
 0x1b0   :  { %v806_v35 = vcombine.high %v804_v33, %v804_v33  ;;  %v813_v38 = vrot.slane %v804_v33, %v1862_v14  ;;  %v800_v40 = vsub.f32 %v26_v36, %v799_v34 }
 0x1b2   :  { %v820_v39 = vrot.slane %v806_v35, %v1862_v14  ;;  %v821_v37 = vcombine.high %v813_v38, %v813_v38  ;;  %v827_v7 = vmul.f32 %v813_v38, %v2066_v50  ;;  %v831_v8 = vmul.f32 %v813_v38, %v2072_v54 }
 0x1b3   :  { %v836_v42 = vmul.f32 %v813_v38, %v2102_v15  ;;  %v840_v43 = vmul.f32 %v813_v38, %v2135_v29  ;;  %v848_v9 = vrot.slane %v800_v40, %v2187_v30 }
 0x1b4   :  { %v822_v41 = vcombine.high %v820_v39, %v820_v39  ;;  %v828_v52 = vmul.f32 %v821_v37, %v2054_v44  ;;  %v829_v6 = vmul.f32 %v820_v39, %v2069_v51  ;;  %v832_v58 = vmul.f32 %v821_v37, %v2060_v48 }
 0x1b5   :  { %v833_v60 = vmul.f32 %v820_v39, %v2063_v49  ;;  %v837_v3 = vmul.f32 %v821_v37, %v2107_v20  ;;  %v838_v50 = vmul.f32 %v820_v39, %v2119_v31  ;;  %v841_v15 = vmul.f32 %v821_v37, %v2139_v10 }
 0x1b6   :  { %v830_v54 = vmul.f32 %v822_v41, %v2057_v46  ;;  %v850_v27 = vcombine.high %v848_v9, %v848_v9  ;;  %v857_v29 = vrot.slane %v848_v9, %v1862_v14  ;;  %v834_v44 = vmul.f32 %v822_v41, %v2075_v61 }
 0x1b7   :  { %v839_v51 = vmul.f32 %v822_v41, %v2112_v24  ;;  %v842_v55 = vmul.f32 %v820_v39, %v2152_v4  ;;  %v843_v48 = vmul.f32 %v822_v41, %v2158_v16 }
 0x1b8   :  { %v864_v49 = vrot.slane %v850_v27, %v1862_v14  ;;  %v865_v20 = vcombine.high %v857_v29, %v857_v29  ;;  %v871_v47 = vadd.f32 %v857_v29, %v827_v7  ;;  %v875_v31 = vadd.f32 %v857_v29, %v831_v8 }
 0x1b9   :  { %v880_v56 = vadd.f32 %v857_v29, %v836_v42  ;;  %v884_v46 = vadd.f32 %v857_v29, %v840_v43 }
 0x1ba   :  { %v866_v57 = vcombine.high %v864_v49, %v864_v49  ;;  %v872_v10 = vadd.f32 %v865_v20, %v828_v52  ;;  %v873_v62 = vadd.f32 %v864_v49, %v829_v6  ;;  %v876_v53 = vadd.f32 %v865_v20, %v832_v58 }
 0x1bb   :  { %v877_v1 = vadd.f32 %v864_v49, %v833_v60  ;;  %v881_v5 = vadd.f32 %v865_v20, %v837_v3  ;;  %v882_v61 = vadd.f32 %v864_v49, %v838_v50  ;;  %v885_v11 = vadd.f32 %v865_v20, %v841_v15 }
 0x1bc   :  { %v874_v24 = vadd.f32 %v866_v57, %v830_v54  ;;  %v878_v12 = vadd.f32 %v866_v57, %v834_v44  ;;  %v883_v4 = vadd.f32 %v866_v57, %v839_v51  ;;  %v886_v13 = vadd.f32 %v864_v49, %v842_v55 }
 0x1bd   :  { %v887_v16 = vadd.f32 %v866_v57, %v843_v48  ;;  %v889_v17 = vmax.f32 %v871_v47, 0.0  ;;  %v890_v18 = vmax.f32 %v872_v10, 0.0  ;;  %v891_v19 = vmax.f32 %v873_v62, 0.0 }
 0x1be   :  { %v892_v21 = vmax.f32 %v874_v24, 0.0  ;;  %v893_v22 = vmax.f32 %v875_v31, 0.0  ;;  %v894_v59 = vmax.f32 %v876_v53, 0.0  ;;  %v895_v23 = vmax.f32 %v877_v1, 0.0 }
 0x1bf   :  { %v896_v25 = vmax.f32 %v878_v12, 0.0  ;;  %v898_v45 = vmax.f32 %v880_v56, 0.0  ;;  %v899_v0 = vmax.f32 %v881_v5, 0.0  ;;  %v900_v28 = vmax.f32 %v882_v61, 0.0 }
 0x1c0   :  { %v901_v26 = vmax.f32 %v883_v4, 0.0  ;;  %v902_v32 = vmax.f32 %v884_v46, 0.0  ;;  %v903_v33 = vmax.f32 %v885_v11, 0.0  ;;  %v904_v34 = vmax.f32 %v886_v13, 0.0 }
 0x1c1   :  { %v905_v36 = vmax.f32 %v887_v16, 0.0  ;;  %v925_v35 = vcombine.low %v889_v17, %v890_v18  ;;  %v926_v38 = vcombine.low %v891_v19, %v892_v21  ;;  %v942_v39 = vcombine.low %v893_v22, %v894_v59 }
 0x1c2   :  { %v943_v40 = vcombine.low %v895_v23, %v896_v25  ;;  %v966_v41 = vcombine.low %v898_v45, %v899_v0  ;;  %v967_v7 = vcombine.low %v900_v28, %v901_v26  ;;  %v983_v8 = vcombine.low %v902_v32, %v903_v33 }
 0x1c3   :  { %v933_v37 = vrot.slane %v925_v35, %v1862_v14  ;;  %v940_v42 = vrot.slane %v926_v38, %v1862_v14  ;;  %v950_v43 = vrot.slane %v942_v39, %v1862_v14  ;;  %v984_v6 = vcombine.low %v904_v34, %v905_v36 }
 0x1c4   :  { %v957_v52 = vrot.slane %v943_v40, %v1862_v14  ;;  %v974_v9 = vrot.slane %v966_v41, %v1862_v14  ;;  %v981_v58 = vrot.slane %v967_v7, %v1862_v14  ;;  %v991_v50 = vrot.slane %v983_v8, %v1862_v14 }
 0x1c5   :  { %v941_v60 = vcombine.low %v933_v37, %v940_v42  ;;  %v998_v54 = vrot.slane %v984_v6, %v1862_v14 }
 0x1c6   :  { %v958_v3 = vcombine.low %v950_v43, %v957_v52  ;;  %v982_v15 = vcombine.low %v974_v9, %v981_v58 }
 0x1c7   :  { %v999_v27 = vcombine.low %v991_v50, %v998_v54  ;;  %1013 = vst.msk [vmem:[#allocation2] sm:$0xff] %vm632_vm10, %v941_v60 }
 0x1c8   :  { %1014 = vst.msk [vmem:[#allocation2 + $0x8] sm:$0xff] %vm632_vm10, %v958_v3  ;;  %1016 = vst.msk [vmem:[#allocation2 + $0x18] sm:$0xff] %vm632_vm10, %v982_v15 }
 0x1c9   :  { %1017 = vst.msk [vmem:[#allocation2 + $0x20] sm:$0xff] %vm632_vm10, %v999_v27 }
 0x1cf   :  { %v1024_v29 = vld [vmem:[#allocation2] ss:$2 sm:$0xff]  ;;  %v1028_v44 = vld [vmem:[#allocation2 + $0x1] ss:$2 sm:$0xff] }
 0x1d0   :  { %v1031_v51 = vadd.f32 %v1028_v44, %v1024_v29  ;;  %v1026_v55 = vld [vmem:[#allocation2 + $0x18] ss:$2 sm:$0xff]  ;;  %v1030_v48 = vld [vmem:[#allocation2 + $0x19] ss:$2 sm:$0xff] }
 0x1d1   :  { %v1032_v20 = vadd.f32 %v1030_v48, %v1026_v55 }
 0x1d2   :  { %v1033_v49 = vmul.f32 0.5, %v1031_v51 }
 0x1d3   :  { %v1034_v47 = vmul.f32 0.5, %v1032_v20 }
 0x1d4   :  { %1035 = vst.msk [vmem:[#allocation3 + $0x1] sm:$0xff] %vm632_vm10, %v1033_v49 }
 0x1d5   :  { %1036 = vst.msk [vmem:[#allocation3 + $0x11] sm:$0xff] %vm632_vm10, %v1034_v47 }
 0x1db   :  { %v1037_v31 = vld [vmem:[#allocation3] sm:$0xff]  ;;  %v1704_v13 = vld.sshfl [vmem:[#allocation3 + $0x8] sm:$0x3 pattern:$0x76325410] }
 0x1dc   :  { %v1051_v56 = vcombine.high %v1037_v31, %v1037_v31  ;;  %v1058_v46 = vrot.slane %v1037_v31, %v1862_v14  ;;  %v1039_v57 = vld [vmem:[#allocation3 + $0x10] sm:$0xff]  ;;  %v1705_v23 = vld.sshfl [vmem:[#allocation3 + $0x18] sm:$0x3 pattern:$0x76325410] }
 0x1dd   :  { %v1075_v53 = vcombine.high %v1039_v57, %v1039_v57  ;;  %v1082_v1 = vrot.slane %v1039_v57, %v1862_v14 }
 0x1de   :  { %v1065_v10 = vrot.slane %v1051_v56, %v1862_v14  ;;  %v1066_v62 = vcombine.high %v1058_v46, %v1058_v46 }
 0x1df   :  { %v1089_v11 = vrot.slane %v1075_v53, %v1862_v14  ;;  %v1090_v24 = vcombine.high %v1082_v1, %v1082_v1  ;;  %v1116_v18 = vcombine.low %v1704_v13, %v1082_v1 }
 0x1e0   :  { %v1067_v5 = vcombine.high %v1065_v10, %v1065_v10  ;;  %v1099_v61 = vcombine.low %v1058_v46, %v1066_v62 }
 0x1e1   :  { %v1117_v4 = vcombine.low %v1090_v24, %v1089_v11  ;;  %v1091_v22 = vcombine.high %v1089_v11, %v1089_v11  ;;  %v1124_v59 = vrot.slane %v1116_v18, %v1862_v14 }
 0x1e2   :  { %v1100_v12 = vcombine.low %v1065_v10, %v1067_v5  ;;  %v1107_v16 = vrot.slane %v1099_v61, %v1862_v14 }
 0x1e3   :  { %v1131_v21 = vrot.slane %v1117_v4, %v1862_v14  ;;  %v1133_v45 = vcombine.low %v1091_v22, %v1705_v23 }
 0x1e4   :  { %v1114_v17 = vrot.slane %v1100_v12, %v1862_v14 }
 0x1e5   :  { %v1132_v25 = vcombine.low %v1124_v59, %v1131_v21  ;;  %v1140_v0 = vrot.slane %v1133_v45, %v1862_v14 }
 0x1e6   :  { %v1115_v19 = vcombine.low %v1107_v16, %v1114_v17 }
 0x1e8   :  { %1750 = vmatmul.mubr.msk.f32.vlgmr.msra.gmra.mrb[0].mxu1 %vm632_vm10, %v1115_v19 }
 0x1e9   :  { %1752 = vmatprep.mubr.msk.f32.mxu1 %vm1807_vm1, %v1806_v2 }
 0x1ec   :  { %1753 = vmatmul.mubr.msk.f32.gmra.mrb[2].mxu1 %vm632_vm10, %v1132_v25 }
 0x1ed   :  { %1755 = vmatprep.mubr.msk.f32.mxu1 %vm1807_vm1, %v1806_v2 }
 0x1f0   :  { %1756 = vmatmul.mubr.msk.f32.gmra.mrb[4].mxu1 %vm632_vm10, %v1140_v0 }
 0x2bb   :  { %v1213_v28 = vpop.f32.mrb[0].mxu1 }
 0x2bc   :  { %v1230_v26 = vcombine.high %v1213_v28, %v1213_v28  ;;  %v1237_v32 = vrot.slane %v1213_v28, %v1862_v14  ;;  %v1751_v33 = vpop.f32.mrb[1].mxu1 }
 0x2be   :  { %v1244_v34 = vrot.slane %v1230_v26, %v1862_v14  ;;  %v1245_v36 = vcombine.high %v1237_v32, %v1237_v32  ;;  %v1709_v38 = vrot.slane %v1237_v32, 9 }
 0x2bf   :  { %v1218_v35 = vpop.f32.mrb[2].mxu1 }
 0x2c0   :  { %v1247_v39 = vcombine.high %v1218_v35, %v1218_v35  ;;  %v2247_v40 = vrot.slane %v1218_v35, %v1862_v14  ;;  %v1754_v37 = vpop.f32.mrb[3].mxu1  ;;  %v1284_v2 = vrot.slane %v1245_v36, 7  ;;  %v1287_v41 = vrot.slane %v1244_v34, 7 }
 0x2c1   :  { %v1246_v7 = vcombine.high %v1244_v34, %v1244_v34 }
 0x2c2   :  { %v1261_v8 = vrot.slane %v1247_v39, %v1862_v14  ;;  %v1262_v42 = vcombine.high %v2247_v40, %v2247_v40  ;;  %v1285_v43 = vsel %vm1910_vm9, %v1709_v38, %v1284_v2  ;;  %v1286_v52 = vrot.slane %v1284_v2, 2 }
 0x2c3   :  { %1310 = vrot.lane.b32.xlu0 %v1285_v43, %s1809_s0  ;;  %v1223_v6 = vpop.f32.mrb[4].mxu1  ;;  %v1289_v9 = vrot.slane %v1287_v41, 2  ;;  %v1290_v58 = vrot.slane %v1246_v7, 7  ;;  %v1293_v44 = vrot.slane %v2247_v40, 7 }
 0x2c4   :  { %v1270_v60 = vrot.slane %v1223_v6, %v1862_v14  ;;  %v1757_v3 = vpop.f32.mrb[5].mxu1  ;;  %v1288_v50 = vsel %vm1910_vm9, %v1286_v52, %v1287_v41  ;;  %v1298_v54 = vrot.slane %v1261_v8, 7  ;;  %v1263_v27 = vcombine.high %v1261_v8, %v1261_v8 }
 0x2c5   :  { %1312 = vrot.lane.b32.xlu1 %v1288_v50, %s1809_s0  ;;  %v1292_v15 = vrot.slane %v1290_v58, 2  ;;  %v1291_v29 = vsel %vm1910_vm9, %v1289_v9, %v1290_v58  ;;  %v1710_v51 = vrot.slane %v1262_v42, 9  ;;  %v1295_v1 = vrot.slane %v1293_v44, 2 }
 0x2c6   :  { %v1301_v55 = vrot.slane %v1263_v27, 7  ;;  %v1271_v48 = vcombine.high %v1270_v60, %v1270_v60  ;;  %v1304_v49 = vrot.slane %v1270_v60, 7  ;;  %v1300_v47 = vrot.slane %v1298_v54, 2 }
 0x2c7   :  { %1314 = vrot.lane.b32.xlu0 %v1291_v29, %s1809_s0  ;;  %v1294_v20 = vsel %vm1910_vm9, %v1292_v15, %v1293_v44  ;;  %v1299_v31 = vsel %vm1910_vm9, %v1710_v51, %v1298_v54 }
 0x2c8   :  { %v1303_v56 = vrot.slane %v1301_v55, 2  ;;  %v1302_v46 = vsel %vm1910_vm9, %v1300_v47, %v1301_v55  ;;  %v1306_v57 = vrot.slane %v1304_v49, 2  ;;  %v1307_v10 = vrot.slane %v1271_v48, 7 }
 0x2c9   :  { %1316 = vrot.lane.b32.xlu1 %v1294_v20, %s1809_s0 }
 0x2ca   :  { %v1305_v62 = vsel %vm1910_vm9, %v1303_v56, %v1304_v49  ;;  %v1308_v53 = vsel %vm1910_vm9, %v1306_v57, %v1307_v10  ;;  %v1309_v5 = vrot.slane %v1307_v10, 2 }
 0x2cb   :  { %1320 = vrot.lane.b32.xlu0 %v1299_v31, %s1809_s0 }
 0x2cd   :  { %1322 = vrot.lane.b32.xlu1 %v1302_v46, %s1809_s0 }
 0x2cf   :  { %1324 = vrot.lane.b32.xlu0 %v1305_v62, %s1809_s0 }
 0x2d1   :  { %1326 = vrot.lane.b32.xlu1 %v1308_v53, %s1809_s0 }
 0x2d3   :  { %1318 = vrot.lane.b32.xlu0 %v1295_v1, %s1809_s0 }
 0x2d5   :  { %1328 = vrot.lane.b32.xlu1 %v1309_v5, %s1809_s0 }
 0x335   :  { %v1311_v61 = vpop.permute.xlu0 %1310 }
 0x336   :  { %v2286_v63 = vadd.f32 %v1311_v61, %v1237_v32 }
 0x337   :  { %v1313_v11 = vpop.permute.xlu1 %1312 }
 0x338   :  { %v2280_v12 = vadd.f32 %v1313_v11, %v1245_v36  ;;  %v1425_v45 = vmul.f32 %v2286_v63, %v2286_v63 }
 0x339   :  { %v1315_v24 = vpop.permute.xlu0 %1314 }
 0x33a   :  { %v2282_v4 = vadd.f32 %v1315_v24, %v1244_v34  ;;  %v1426_v19 = vmul.f32 %v2280_v12, %v2280_v12  ;;  %v1360_v0 = vcombine.low %v2286_v63, %v2280_v12 }
 0x33b   :  { %v1317_v13 = vpop.permute.xlu1 %1316 }
 0x33c   :  { %v2284_v16 = vadd.f32 %v1317_v13, %v1246_v7  ;;  %v1427_v21 = vmul.f32 %v2282_v4, %v2282_v4  ;;  %v1445_v33 = vcombine.low %v1425_v45, %v1426_v19  ;;  %v1368_v2 = vrot.slane %v1360_v0, %v1862_v14 }
 0x33d   :  { %v1321_v17 = vpop.permute.xlu0 %1320 }
 0x33e   :  { %v1428_v18 = vmul.f32 %v2284_v16, %v2284_v16  ;;  %v1361_v22 = vcombine.low %v2282_v4, %v2284_v16  ;;  %v2296_v23 = vadd.f32 %v1321_v17, %v1262_v42  ;;  %v1453_v6 = vrot.slane %v1445_v33, %v1862_v14 }
 0x33f   :  { %v1323_v59 = vpop.permute.xlu1 %1322 }
 0x340   :  { %v2298_v25 = vadd.f32 %v1323_v59, %v1261_v8  ;;  %v1446_v28 = vcombine.low %v1427_v21, %v1428_v18  ;;  %v1375_v34 = vrot.slane %v1361_v22, %v1862_v14  ;;  %v1430_v38 = vmul.f32 %v2296_v23, %v2296_v23 }
 0x341   :  { %v1325_v26 = vpop.permute.xlu0 %1324 }
 0x342   :  { %v1431_v32 = vmul.f32 %v2298_v25, %v2298_v25  ;;  %v2307_v36 = vadd.f32 %v1325_v26, %v1263_v27  ;;  %v1384_v39 = vcombine.low %v2296_v23, %v2298_v25  ;;  %v1460_v41 = vrot.slane %v1446_v28, %v1862_v14 }
 0x343   :  { %v1327_v35 = vpop.permute.xlu1 %1326  ;;  %v1376_v9 = vcombine.low %v1368_v2, %v1375_v34 }
 0x344   :  { %v2313_v37 = vadd.f32 %v1327_v35, %v1270_v60  ;;  %v1469_v8 = vcombine.low %v1430_v38, %v1431_v32  ;;  %v1432_v42 = vmul.f32 %v2307_v36, %v2307_v36  ;;  %v1392_v3 = vrot.slane %v1384_v39, %v1862_v14 }
 0x345   :  { %v1319_v7 = vpop.permute.xlu0 %1318  ;;  %v1461_v27 = vcombine.low %v1453_v6, %v1460_v41  ;;  %v1412_v20 = vsel %vm632_vm10, %v1376_v9, 0.0 }
 0x346   :  { %v1385_v43 = vcombine.low %v2307_v36, %v2313_v37  ;;  %v1433_v52 = vmul.f32 %v2313_v37, %v2313_v37  ;;  %v2325_v58 = vadd.f32 %v1319_v7, %v2247_v40  ;;  %v1477_v51 = vrot.slane %v1469_v8, %v1862_v14  ;;  %v1045_v8 = vld [vmem:[%s2392_s3 + $0x2] sm:$0x1] }
 0x347   :  { %v1329_v60 = vpop.permute.xlu1 %1328  ;;  %v1497_v10 = vsel %vm632_vm10, %v1461_v27, 0.0 }
 0x348   :  { %v1399_v50 = vrot.slane %v1385_v43, %v1862_v14  ;;  %v1470_v54 = vcombine.low %v1432_v42, %v1433_v52  ;;  %v1349_v15 = vadd.f32 %v1329_v60, %v1271_v48  ;;  %v1383_v29 = vrot.slane %v2325_v58, %v1862_v14  ;;  %v1046_v52 = vld [vmem:[%s2392_s3 + $0x3] sm:$0x1]  ;;  %s1811_s3 = smov [#allocation4]  }
 0x349   :  { %v1429_v44 = vmul.f32 %v2325_v58, %v2325_v58  ;;  %s1683_s17 = sshll.u32 %s1811_s3, 4  ;;  %s1684_s17 = int_to_ptr.vmem [resolvable:$true] %s1683_s17 }
 0x34a   :  { %v1400_v55 = vcombine.low %v1392_v3, %v1399_v50  ;;  %v1484_v40 = vrot.slane %v1470_v54, %v1862_v14  ;;  %v1434_v49 = vmul.f32 %v1349_v15, %v1349_v15  ;;  %v1413_v47 = vsel %vm636_vm12, %v1383_v29, 0.0  ;;  %s1782_s18 = scalar_lea.vmem %s1684_s17, 128  ;;  %p1787_p1 = scmp.lt.s32.totalorder %s1684_s17, %s1684_s17 }
 0x34b   :  { %v1468_v31 = vrot.slane %v1429_v44, %v1862_v14  ;;  %v1407_v48 = vrot.slane %v1349_v15, %v1862_v14  ;;  %v1414_v46 = vadd.f32 %v1413_v47, %v1412_v20  ;;  %p1783_p0 = scmp.ne.s32.totalorder %s1684_s17, %s1782_s18  ;;  %p1788_p2 = scmp.lt.s32.totalorder %s1782_s18, %s1782_s18 }
 0x34c   :  { %v1485_v56 = vcombine.low %v1477_v51, %v1484_v40  ;;  %v1415_v57 = vsel %vm632_vm10, %v1400_v55, 0.0  ;;  %v1492_v53 = vrot.slane %v1434_v49, %v1862_v14 }
 0x34d   :  { %v1498_v62 = vsel %vm636_vm12, %v1468_v31, 0.0  ;;  %v1416_v5 = vadd.f32 %v1415_v57, %v1414_v46  ;;  %v1417_v11 = vsel %vm636_vm12, %v1407_v48, 0.0  ;;  %p1789_p3 = por %p1788_p2, %p1787_p1 }
 0x34e   :  { %v1499_v1 = vadd.f32 %v1498_v62, %v1497_v10  ;;  %v1500_v61 = vsel %vm632_vm10, %v1485_v56, 0.0  ;;  %v1502_v17 = vsel %vm636_vm12, %v1492_v53, 0.0 }
 0x34f   :  { %v1418_v13 = vadd.f32 %v1417_v11, %v1416_v5  ;;  %p1790_p4 = pnand %p1789_p3, %p1783_p0 }
 0x350   :  { %v1501_v24 = vadd.f32 %v1500_v61, %v1499_v1 }
 0x351   :  { %v1419_v18 = vrot.slane %v1418_v13, 4 }
 0x352   :  { %v1503_v19 = vadd.f32 %v1502_v17, %v1501_v24 }
 0x353   :  { %v1420_v21 = vadd.f32 %v1419_v18, %v1418_v13 }
 0x354   :  { %v1504_v22 = vrot.slane %v1503_v19, 4 }
 0x355   :  { %v1421_v59 = vrot.slane %v1420_v21, 2 }
 0x356   :  { %v1505_v45 = vadd.f32 %v1504_v22, %v1503_v19 }
 0x357   :  { %v1422_v0 = vadd.f32 %v1421_v59, %v1420_v21 }
 0x358   :  { %v1506_v28 = vrot.slane %v1505_v45, 2 }
 0x359   :  { %v1423_v26 = vrot.slane %v1422_v0, 1 }
 0x35a   :  { %v1507_v32 = vadd.f32 %v1506_v28, %v1505_v45 }
 0x35b   :  { %v1424_v33 = vadd.f32 %v1423_v26, %v1422_v0 }
 0x35c   :  { %v1508_v34 = vrot.slane %v1507_v32, 1 }
 0x35d   :  { %v1510_v38 = vmul.f32 0.055555556, %v1424_v33 }
 0x35e   :  { %v1509_v35 = vadd.f32 %v1508_v34, %v1507_v32 }
 0x35f   :  { %v1512_v2 = vmul.f32 %v1510_v38, %v1510_v38 }
 0x360   :  { %v1511_v39 = vmul.f32 0.055555556, %v1509_v35 }
 0x362   :  { %v1513_v41 = vsub.f32 %v1511_v39, %v1512_v2 }
 0x364   :  { %v1514_v7 = vadd.f32 1e-05, %v1513_v41 }
 0x366   :  { %1780 = vrsqrt.f32 %v1514_v7 }
 0x370   :  { %v1781_v42 = vpop.eup %1780 }
 0x371   :  { %v1516_v43 = vmul.f32 %v1781_v42, %v1045_v8 }
 0x373   :  { %v1517_v6 = vmul.f32 %v1516_v43, %v1510_v38  ;;  %v1522_v9 = vrot.slane %v1516_v43, %v2187_v30 }
 0x375   :  { %v1518_v60 = vsub.f32 %v1046_v52, %v1517_v6  ;;  %v1524_v3 = vcombine.high %v1522_v9, %v1522_v9  ;;  %v1531_v50 = vrot.slane %v1522_v9, %v1862_v14 }
 0x377   :  { %v1538_v54 = vrot.slane %v1524_v3, %v1862_v14  ;;  %v1539_v27 = vcombine.high %v1531_v50, %v1531_v50  ;;  %v1558_v29 = vrot.slane %v1518_v60, %v2187_v30  ;;  %v1545_v51 = vmul.f32 %v1531_v50, %v2286_v63 }
 0x378   :  { %v1549_v55 = vmul.f32 %v1531_v50, %v2325_v58  ;;  %v1550_v40 = vmul.f32 %v1531_v50, %v2296_v23  ;;  %v1554_v49 = vmul.f32 %v1531_v50, %v1349_v15 }
 0x379   :  { %v1540_v44 = vcombine.high %v1538_v54, %v1538_v54  ;;  %v1560_v20 = vcombine.high %v1558_v29, %v1558_v29  ;;  %v1567_v47 = vrot.slane %v1558_v29, %v1862_v14  ;;  %v1546_v31 = vmul.f32 %v1539_v27, %v2280_v12 }
 0x37a   :  { %v1547_v48 = vmul.f32 %v1538_v54, %v2282_v4  ;;  %v1551_v56 = vmul.f32 %v1539_v27, %v2298_v25  ;;  %v1552_v46 = vmul.f32 %v1538_v54, %v2307_v36 }
 0x37b   :  { %v1574_v30 = vrot.slane %v1560_v20, %v1862_v14  ;;  %v1575_v57 = vcombine.high %v1567_v47, %v1567_v47  ;;  %v1581_v63 = vadd.f32 %v1567_v47, %v1545_v51  ;;  %v1585_v10 = vadd.f32 %v1567_v47, %v1549_v55 }
 0x37c   :  { %v1548_v58 = vmul.f32 %v1540_v44, %v2284_v16  ;;  %v1553_v23 = vmul.f32 %v1540_v44, %v2313_v37  ;;  %v1586_v15 = vadd.f32 %v1567_v47, %v1550_v40  ;;  %v1590_v62 = vadd.f32 %v1567_v47, %v1554_v49 }
 0x37d   :  { %v1576_v53 = vcombine.high %v1574_v30, %v1574_v30  ;;  %v1582_v1 = vadd.f32 %v1575_v57, %v1546_v31  ;;  %v1583_v12 = vadd.f32 %v1574_v30, %v1547_v48  ;;  %v1587_v5 = vadd.f32 %v1575_v57, %v1551_v56 }
 0x37e   :  { %v1588_v4 = vadd.f32 %v1574_v30, %v1552_v46  ;;  %v1591_v61 = vmax.f32 %v1581_v63, 0.0  ;;  %v1595_v25 = vmax.f32 %v1585_v10, 0.0  ;;  %v1596_v13 = vmax.f32 %v1586_v15, 0.0 }
 0x37f   :  { %v1584_v11 = vadd.f32 %v1576_v53, %v1548_v58  ;;  %v1589_v36 = vadd.f32 %v1576_v53, %v1553_v23  ;;  %v1592_v24 = vmax.f32 %v1582_v1, 0.0  ;;  %v1593_v17 = vmax.f32 %v1583_v12, 0.0 }
 0x380   :  { %v1597_v18 = vmax.f32 %v1587_v5, 0.0  ;;  %v1600_v19 = vmax.f32 %v1590_v62, 0.0  ;;  %v1634_v16 = vrot.slane %v1595_v25, %v1862_v14  ;;  %v1598_v37 = vmax.f32 %v1588_v4, 0.0 }
 0x381   :  { %v1594_v21 = vmax.f32 %v1584_v11, 0.0  ;;  %v1599_v22 = vmax.f32 %v1589_v36, 0.0  ;;  %v1611_v59 = vcombine.low %v1591_v61, %v1592_v24 }
 0x382   :  { %v1635_v45 = vcombine.low %v1596_v13, %v1597_v18  ;;  %v1658_v0 = vrot.slane %v1600_v19, %v1862_v14  ;;  %1664 = vst.msk [vmem:[#allocation2 + $0x8] sm:$0x1] %vm636_vm12, %v1634_v16 }
 0x383   :  { %v1612_v28 = vcombine.low %v1593_v17, %v1594_v21  ;;  %v1636_v26 = vcombine.low %v1598_v37, %v1599_v22  ;;  %v1619_v32 = vrot.slane %v1611_v59, %v1862_v14 }
 0x384   :  { %1666 = vst.msk [vmem:[#allocation2 + $0x20] sm:$0x1] %vm636_vm12, %v1658_v0  ;;  %v1643_v34 = vrot.slane %v1635_v45, %v1862_v14 }
 0x385   :  { %v1626_v33 = vrot.slane %v1612_v28, %v1862_v14  ;;  %v1650_v35 = vrot.slane %v1636_v26, %v1862_v14 }
 0x387   :  { %v1627_v38 = vcombine.low %v1619_v32, %v1626_v33  ;;  %v1651_v39 = vcombine.low %v1643_v34, %v1650_v35 }
 0x389   :  { %1663 = vst.msk [vmem:[#allocation2] sm:$0xff] %vm632_vm10, %v1627_v38  ;;  %1665 = vst.msk [vmem:[#allocation2 + $0x18] sm:$0xff] %vm632_vm10, %v1651_v39 }
 0x390   :  { %v1667_v2 = vld [vmem:[#allocation2] ss:$2 sm:$0xf]  ;;  %v1668_v41 = vld [vmem:[#allocation2 + $0x18] ss:$2 sm:$0xf] }
 0x391   :  { %v1669_v7 = vld [vmem:[#allocation2 + $0x1] ss:$2 sm:$0xf]  ;;  %v1670_v8 = vld [vmem:[#allocation2 + $0x19] ss:$2 sm:$0xf] }
 0x392   :  { %v1671_v42 = vadd.f32 %v1669_v7, %v1667_v2  ;;  %v1672_v43 = vadd.f32 %v1670_v8, %v1668_v41 }
 0x394   :  { %v1673_v52 = vmul.f32 0.5, %v1671_v42  ;;  %v1674_v6 = vmul.f32 0.5, %v1672_v43 }
 0x396   :  { %1676 = vst.msk [vmem:[#allocation4] sm:$0xf] %vm1675_vm13, %v1673_v52  ;;  %1677 = vst.msk [vmem:[#allocation4 + $0x4] sm:$0xf] %vm1675_vm13, %v1674_v6 }
 0x397   :  { %1793 = shalt.err (!%p1790_p4)
}
 0x398   :  { %s1794_s1 = scalar_lea.hbm %s2393_s4, 128 }
 0x399   :  { %p1795_p5 = scmp.ne.s32.totalorder %s2393_s4, %s1794_s1  ;;  %p1798_p6 = scmp.lt.u32.totalorder %s1794_s1, %s2393_s4 }
 0x39b   :  { %p1800_p7 = pnand %p1798_p6, %p1795_p5 }
 0x39d   :  { %1803 = shalt.err (!%p1800_p7)
}
 0x39e   :  { %s1812_s25 = smov 64   ;;  %s1813_s26 = smov 4  }
 0x39f   :  { %1689 = dma.vmem_to_hbm [thread:$0]  %s1684_s17, 128, %s2393_s4, [#allocation5], %s1812_s25, %s1812_s25, %s1813_s26  }
 0x3a0   :  { %1804 = dma.done.wait [#allocation5], 128  }
 0x3a1   :  { %1805 = vsyncadd [#allocation5], 4294967168 }
 0x3a2   :  { %1693 = vsyncpa [#allocation5], 1 }

</bundles_post_ra>
